<compile_context>
chip_gen: v6e
topology: v6e:2x2x1
jax: 0.10.0
libtpu: 0.0.40
codegen_flags: <defaults>
</compile_context>

<pallas_src>
import functools

import numpy as np
import jax
import jax.numpy as jnp
from jax.experimental import pallas as pl
from jax.experimental.pallas import tpu as pltpu  # noqa: F401  (kept for extensions)


def _lstm_cell_from_gates(gates, hidden_size):
    """Single LSTM step with zero previous (h, c), given pre-activation gates (..., 4H)."""
    H = hidden_size
    i_g = jax.nn.sigmoid(gates[..., 0 * H:1 * H])
    # forget gate multiplies c_prev == 0, so it drops out of the math entirely
    g_g = jnp.tanh(gates[..., 2 * H:3 * H])
    o_g = jax.nn.sigmoid(gates[..., 3 * H:4 * H])
    return o_g * jnp.tanh(i_g * g_g)


def music_lstm_kernel(x_ref, w0_ref, b0_ref, *rest, hidden_size, num_layers):
    """All T per-position LSTM heads + Linear(H, 1) + sigmoid in one invocation.

    x_ref   : (T, B, I)        head-major inputs
    w0_ref  : (T, I, 4H)       layer-0 input weights (pre-transposed)
    b0_ref  : (T, 1, 4H)       combined b_ih + b_hh, layer 0
    wr_ref  : (L-1, T, H, 4H)  recurrent-layer input weights   (only if L > 1)
    br_ref  : (L-1, T, 1, 4H)  combined recurrent biases       (only if L > 1)
    wl_ref  : (T, 1, H)        Linear(H, 1) weights
    bl_ref  : (1, T)           Linear(H, 1) biases
    eye_ref : (B, B)           identity used to emit (B, T) via an MXU contraction
    out_ref : (B, T)
    """
    if num_layers > 1:
        wr_ref, br_ref, wl_ref, bl_ref, eye_ref, out_ref = rest
    else:
        wl_ref, bl_ref, eye_ref, out_ref = rest

    H = hidden_size

    # LSTM layer 0, all heads at once: gates = x @ W_ih^T + (b_ih + b_hh).
    gates = jnp.einsum('tbi,tif->tbf', x_ref[...], w0_ref[...],
                       preferred_element_type=jnp.float32) + b0_ref[...]
    h = _lstm_cell_from_gates(gates, H)                       # (T, B, H)

    # LSTM layers 1..L-1 (static unrolled loop), still batched over heads.
    for l in range(num_layers - 1):
        gates = jnp.einsum('tbh,thf->tbf', h, wr_ref[l],
                           preferred_element_type=jnp.float32) + br_ref[l]
        h = _lstm_cell_from_gates(gates, H)

    # Linear(H, 1) per head as a multiply + lane reduction (no N=1 matmul).
    y_tb = jnp.sum(h * wl_ref[...], axis=-1)                  # (T, B)

    # (T, B) -> (B, T) by contracting the batch axis with a tiny identity on the
    # MXU (standard A @ B^T dot pattern), so the output is written once as a
    # lane-contiguous (B, T) slab instead of per-head 1-lane masked stores.
    y_bt = jnp.einsum('bc,tc->bt', eye_ref[...], y_tb,
                      preferred_element_type=jnp.float32)     # (B, T)
    out_ref[...] = jax.nn.sigmoid(y_bt + bl_ref[...])


def prepare_params(params, hidden_size, num_layers):
    """One-time (init-time) conversion of PyTorch-layout parameters to kernel layout.

    Done once so the per-call graph contains no weight transposes / bias adds, and
    no dummy recurrent tensors when num_layers == 1.
    """
    H, L = hidden_size, num_layers
    T = params["w_ih0"].shape[0]
    prepped = {
        "w0": jnp.transpose(params["w_ih0"], (0, 2, 1)),                     # (T, I, 4H)
        "b0": (params["b_ih0"] + params["b_hh0"]).reshape(T, 1, 4 * H),      # (T, 1, 4H)
        "wl": params["w_lin"].reshape(T, 1, H),                              # (T, 1, H)
        "bl": params["b_lin"].reshape(1, T),                                 # (1, T)
    }
    if L > 1:
        prepped["wr"] = jnp.transpose(params["w_ihr"], (1, 0, 3, 2))          # (L-1, T, H, 4H)
        prepped["br"] = jnp.transpose(params["b_ihr"] + params["b_hhr"],
                                      (1, 0, 2)).reshape(L - 1, T, 1, 4 * H)  # (L-1, T, 1, 4H)
    return prepped


def music_lstm_forward(x, prepped, hidden_size, num_layers):
    """x: (B, T, input_size) -> (B, T); one LSTM/linear head per sequence position."""
    B, T, I = x.shape
    H, L = hidden_size, num_layers

    x_t = jnp.transpose(x, (1, 0, 2))          # (T, B, I): head-major for the batched matmuls
    eye_b = jnp.eye(B, dtype=jnp.float32)      # compile-time constant under jit

    args = [x_t, prepped["w0"], prepped["b0"]]
    if L > 1:
        args += [prepped["wr"], prepped["br"]]
    args += [prepped["wl"], prepped["bl"], eye_b]

    kernel = functools.partial(music_lstm_kernel, hidden_size=H, num_layers=L)

    # No grid: every operand is mapped whole into VMEM (a few hundred KB here),
    # so there is no per-step pipeline overhead and a single store writes the
    # lane-contiguous (B, T) result.
    return pl.pallas_call(
        kernel,
        out_shape=jax.ShapeDtypeStruct((B, T), jnp.float32),
    )(*args)


def init_params(key, input_size, hidden_size, num_layers, output_size):
    """Deterministic synthetic parameters matching nn.LSTM / nn.Linear shapes."""
    I, H, L, T = input_size, hidden_size, num_layers, output_size
    k = 1.0 / np.sqrt(H)
    keys = jax.random.split(key, 10)
    u = lambda kk, shape: jax.random.uniform(kk, shape, jnp.float32, -k, k)
    params = {
        "w_ih0": u(keys[0], (T, 4 * H, I)),
        # weight_hh_* exist in the PyTorch module but multiply a zero hidden state
        # (single-timestep sequence, zero init), so they never reach the kernel.
        "w_hh0": u(keys[1], (T, 4 * H, H)),
        "b_ih0": u(keys[2], (T, 4 * H)),
        "b_hh0": u(keys[3], (T, 4 * H)),
        "w_ihr": u(keys[4], (T, L - 1, 4 * H, H)) if L > 1 else None,
        "w_hhr": u(keys[5], (T, L - 1, 4 * H, H)) if L > 1 else None,
        "b_ihr": u(keys[6], (T, L - 1, 4 * H)) if L > 1 else None,
        "b_hhr": u(keys[7], (T, L - 1, 4 * H)) if L > 1 else None,
        "w_lin": u(keys[8], (T, 1, H)),
        "b_lin": u(keys[9], (T, 1)),
    }
    return params


def music_lstm_reference(x, params, hidden_size, num_layers):
    """Pure-JAX reference mirroring the PyTorch forward exactly."""
    B, T, I = x.shape
    H, L = hidden_size, num_layers
    outs = []
    for i in range(T):
        h = x[:, i, :]
        gates = h @ params["w_ih0"][i].T + params["b_ih0"][i] + params["b_hh0"][i]
        h = _lstm_cell_from_gates(gates, H)
        for l in range(L - 1):
            gates = h @ params["w_ihr"][i, l].T + params["b_ihr"][i, l] + params["b_hhr"][i, l]
            h = _lstm_cell_from_gates(gates, H)
        y = jax.nn.sigmoid(h @ params["w_lin"][i].T + params["b_lin"][i])   # (B, 1)
        outs.append(y)
    return jnp.concatenate(outs, axis=1)


if __name__ == "__main__":
    # Sequence length == output_size (the forward indexes lstm_layers[i] by position i).
    input_size, hidden_size, num_layers, output_size = 32, 32, 2, 8
    batch = 2
    seq = output_size

    key = jax.random.PRNGKey(0)
    kx, kp = jax.random.split(key)
    x = jax.random.normal(kx, (batch, seq, input_size), jnp.float32)
    params = init_params(kp, input_size, hidden_size, num_layers, output_size)
    prepped = prepare_params(params, hidden_size, num_layers)   # init-time, not per call

    fwd = jax.jit(functools.partial(music_lstm_forward,
                                    hidden_size=hidden_size, num_layers=num_layers))
    out = jax.block_until_ready(fwd(x, prepped))

    ref = music_lstm_reference(x, params, hidden_size, num_layers)
    if out.shape != (batch, seq):
        raise AssertionError(f"bad output shape {out.shape}")
    if not np.allclose(np.asarray(out), np.asarray(ref), atol=1e-5, rtol=1e-5):
        raise AssertionError("Pallas output does not match pure-JAX reference")

    print("KERNEL_OK")
</pallas_src>

<mosaic_0001>
module attributes {stable_mosaic.version = 11 : i64} {
  func.func @music_lstm_kernel(%arg0: memref<8x2x32xf32, #tpu.memory_space<vmem>>, %arg1: memref<8x32x128xf32, #tpu.memory_space<vmem>>, %arg2: memref<8x1x128xf32, #tpu.memory_space<vmem>>, %arg3: memref<1x8x32x128xf32, #tpu.memory_space<vmem>>, %arg4: memref<1x8x1x128xf32, #tpu.memory_space<vmem>>, %arg5: memref<8x1x32xf32, #tpu.memory_space<vmem>>, %arg6: memref<1x8xf32, #tpu.memory_space<vmem>>, %arg7: memref<2x2xf32, #tpu.memory_space<vmem>>, %arg8: memref<2x8xf32, #tpu.memory_space<vmem>>) attributes {dimension_semantics = [], scalar_prefetch = 0 : i64, scratch_operands = 0 : i64, tpu.core_type = #tpu.core_type<tc>} {
    %c0 = arith.constant 0 : index
    %c0_0 = arith.constant 0 : index
    %c0_1 = arith.constant 0 : index
    %0 = vector.load %arg0[%c0, %c0_0, %c0_1] : memref<8x2x32xf32, #tpu.memory_space<vmem>>, vector<8x2x32xf32>
    %c0_2 = arith.constant 0 : index
    %c0_3 = arith.constant 0 : index
    %c0_4 = arith.constant 0 : index
    %1 = vector.load %arg1[%c0_2, %c0_3, %c0_4] : memref<8x32x128xf32, #tpu.memory_space<vmem>>, vector<8x32x128xf32>
    "tpu.trace_start"() <{level = 10 : i32, message = "tbi,tif->tbf"}> : () -> ()
    %cst = arith.constant dense<0.000000e+00> : vector<8x2x128xf32>
    %2 = tpu.matmul %0, %1, %cst {dimension_numbers = #tpu.dot_dimension_numbers<[2], [1], [1], [2], [0, 0, 0, 1, 1, 2], [0], [0]>} : vector<8x2x32xf32>, vector<8x32x128xf32>, vector<8x2x128xf32> -> vector<8x2x128xf32>
    "tpu.trace_stop"() : () -> ()
    %c0_5 = arith.constant 0 : index
    %c0_6 = arith.constant 0 : index
    %c0_7 = arith.constant 0 : index
    %3 = vector.load %arg2[%c0_5, %c0_6, %c0_7] : memref<8x1x128xf32, #tpu.memory_space<vmem>>, vector<8x1x128xf32>
    %4 = vector.broadcast %3 : vector<8x1x128xf32> to vector<8x2x128xf32>
    %5 = arith.addf %2, %4 : vector<8x2x128xf32>
    %6 = vector.extract_strided_slice %5 {offsets = [0, 0, 0], sizes = [8, 2, 32], strides = [1, 1, 1]} : vector<8x2x128xf32> to vector<8x2x32xf32>
    %7 = arith.negf %6 : vector<8x2x32xf32>
    %8 = math.exp %7 : vector<8x2x32xf32>
    %cst_8 = arith.constant 1.000000e+00 : f32
    %9 = vector.broadcast %cst_8 : f32 to vector<8x2x32xf32>
    %10 = arith.addf %9, %8 : vector<8x2x32xf32>
    %11 = arith.divf %9, %10 : vector<8x2x32xf32>
    %12 = vector.extract_strided_slice %5 {offsets = [0, 0, 64], sizes = [8, 2, 32], strides = [1, 1, 1]} : vector<8x2x128xf32> to vector<8x2x32xf32>
    %13 = math.tanh %12 : vector<8x2x32xf32>
    %14 = vector.extract_strided_slice %5 {offsets = [0, 0, 96], sizes = [8, 2, 32], strides = [1, 1, 1]} : vector<8x2x128xf32> to vector<8x2x32xf32>
    %15 = arith.negf %14 : vector<8x2x32xf32>
    %16 = math.exp %15 : vector<8x2x32xf32>
    %cst_9 = arith.constant 1.000000e+00 : f32
    %17 = vector.broadcast %cst_9 : f32 to vector<8x2x32xf32>
    %18 = arith.addf %17, %16 : vector<8x2x32xf32>
    %19 = arith.divf %17, %18 : vector<8x2x32xf32>
    %20 = arith.mulf %11, %13 : vector<8x2x32xf32>
    %21 = math.tanh %20 : vector<8x2x32xf32>
    %22 = arith.mulf %19, %21 : vector<8x2x32xf32>
    %c0_10 = arith.constant 0 : index
    %c0_11 = arith.constant 0 : index
    %c0_12 = arith.constant 0 : index
    %c0_13 = arith.constant 0 : index
    %23 = vector.load %arg3[%c0_10, %c0_11, %c0_12, %c0_13] : memref<1x8x32x128xf32, #tpu.memory_space<vmem>>, vector<1x8x32x128xf32>
    %24 = vector.shape_cast %23 : vector<1x8x32x128xf32> to vector<8x32x128xf32>
    "tpu.trace_start"() <{level = 10 : i32, message = "tbh,thf->tbf"}> : () -> ()
    %cst_14 = arith.constant dense<0.000000e+00> : vector<8x2x128xf32>
    %25 = tpu.matmul %22, %24, %cst_14 {dimension_numbers = #tpu.dot_dimension_numbers<[2], [1], [1], [2], [0, 0, 0, 1, 1, 2], [0], [0]>} : vector<8x2x32xf32>, vector<8x32x128xf32>, vector<8x2x128xf32> -> vector<8x2x128xf32>
    "tpu.trace_stop"() : () -> ()
    %c0_15 = arith.constant 0 : index
    %c0_16 = arith.constant 0 : index
    %c0_17 = arith.constant 0 : index
    %c0_18 = arith.constant 0 : index
    %26 = vector.load %arg4[%c0_15, %c0_16, %c0_17, %c0_18] : memref<1x8x1x128xf32, #tpu.memory_space<vmem>>, vector<1x8x1x128xf32>
    %27 = vector.shape_cast %26 : vector<1x8x1x128xf32> to vector<8x1x128xf32>
    %28 = vector.broadcast %27 : vector<8x1x128xf32> to vector<8x2x128xf32>
    %29 = arith.addf %25, %28 : vector<8x2x128xf32>
    %30 = vector.extract_strided_slice %29 {offsets = [0, 0, 0], sizes = [8, 2, 32], strides = [1, 1, 1]} : vector<8x2x128xf32> to vector<8x2x32xf32>
    %31 = arith.negf %30 : vector<8x2x32xf32>
    %32 = math.exp %31 : vector<8x2x32xf32>
    %cst_19 = arith.constant 1.000000e+00 : f32
    %33 = vector.broadcast %cst_19 : f32 to vector<8x2x32xf32>
    %34 = arith.addf %33, %32 : vector<8x2x32xf32>
    %35 = arith.divf %33, %34 : vector<8x2x32xf32>
    %36 = vector.extract_strided_slice %29 {offsets = [0, 0, 64], sizes = [8, 2, 32], strides = [1, 1, 1]} : vector<8x2x128xf32> to vector<8x2x32xf32>
    %37 = math.tanh %36 : vector<8x2x32xf32>
    %38 = vector.extract_strided_slice %29 {offsets = [0, 0, 96], sizes = [8, 2, 32], strides = [1, 1, 1]} : vector<8x2x128xf32> to vector<8x2x32xf32>
    %39 = arith.negf %38 : vector<8x2x32xf32>
    %40 = math.exp %39 : vector<8x2x32xf32>
    %cst_20 = arith.constant 1.000000e+00 : f32
    %41 = vector.broadcast %cst_20 : f32 to vector<8x2x32xf32>
    %42 = arith.addf %41, %40 : vector<8x2x32xf32>
    %43 = arith.divf %41, %42 : vector<8x2x32xf32>
    %44 = arith.mulf %35, %37 : vector<8x2x32xf32>
    %45 = math.tanh %44 : vector<8x2x32xf32>
    %46 = arith.mulf %43, %45 : vector<8x2x32xf32>
    %c0_21 = arith.constant 0 : index
    %c0_22 = arith.constant 0 : index
    %c0_23 = arith.constant 0 : index
    %47 = vector.load %arg5[%c0_21, %c0_22, %c0_23] : memref<8x1x32xf32, #tpu.memory_space<vmem>>, vector<8x1x32xf32>
    %48 = vector.broadcast %47 : vector<8x1x32xf32> to vector<8x2x32xf32>
    %49 = arith.mulf %46, %48 : vector<8x2x32xf32>
    %cst_24 = arith.constant dense<0.000000e+00> : vector<8x2xf32>
    %50 = vector.multi_reduction <add>, %49, %cst_24 [2] : vector<8x2x32xf32> to vector<8x2xf32>
    %c0_25 = arith.constant 0 : index
    %c0_26 = arith.constant 0 : index
    %51 = vector.load %arg7[%c0_25, %c0_26] : memref<2x2xf32, #tpu.memory_space<vmem>>, vector<2x2xf32>
    "tpu.trace_start"() <{level = 10 : i32, message = "bc,tc->bt"}> : () -> ()
    %cst_27 = arith.constant dense<0.000000e+00> : vector<2x8xf32>
    %52 = tpu.matmul %51, %50, %cst_27 {dimension_numbers = #tpu.dot_dimension_numbers<[1], [1], [0], [0], [0, 0, 1, 0], [], []>} : vector<2x2xf32>, vector<8x2xf32>, vector<2x8xf32> -> vector<2x8xf32>
    "tpu.trace_stop"() : () -> ()
    %c0_28 = arith.constant 0 : index
    %c0_29 = arith.constant 0 : index
    %53 = vector.load %arg6[%c0_28, %c0_29] : memref<1x8xf32, #tpu.memory_space<vmem>>, vector<1x8xf32>
    %54 = vector.broadcast %53 : vector<1x8xf32> to vector<2x8xf32>
    %55 = arith.addf %52, %54 : vector<2x8xf32>
    %56 = arith.negf %55 : vector<2x8xf32>
    %57 = math.exp %56 : vector<2x8xf32>
    %cst_30 = arith.constant 1.000000e+00 : f32
    %58 = vector.broadcast %cst_30 : f32 to vector<2x8xf32>
    %59 = arith.addf %58, %57 : vector<2x8xf32>
    %60 = arith.divf %58, %59 : vector<2x8xf32>
    %c0_31 = arith.constant 0 : index
    %c0_32 = arith.constant 0 : index
    %61 = vector.load %arg8[%c0_31, %c0_32] : memref<2x8xf32, #tpu.memory_space<vmem>>, vector<2x8xf32>
    tpu.vector_store %arg8[%c0_31, %c0_32], %60 {strides = array<i32>} : memref<2x8xf32, #tpu.memory_space<vmem>>, vector<2x8xf32>,
    return
  }
}

</mosaic_0001>

<bundles_post_ra>
// kernel: music_lstm_forward.1
= control target key start
LH: loop header
LB: loop body
LE: loop exit
PB: predicated region body
PF: predicated region fallthrough
CT: control target
= control target key end

     0   :  { %13 = vsyncpa [#allocation3], 0  ;;  %s2936_s0 = inlined_call_operand.vmem [shape: f32[8,2,32], index: 0, kind: input, shape index: {}]   ;;  %s2937_s1 = inlined_call_operand.hbm [shape: f32[8,32,128], index: 1, kind: input, shape index: {}]   ;;  %s2938_s2 = inlined_call_operand.vmem [shape: f32[8,1,128], index: 2, kind: input, shape index: {}]   ;;  %s2939_s3 = inlined_call_operand.hbm [shape: f32[1,8,32,128], index: 3, kind: input, shape index: {}]   ;;  %s2940_s4 = inlined_call_operand.vmem [shape: f32[1,8,1,128], index: 4, kind: input, shape index: {}]   ;;  %s2941_s5 = inlined_call_operand.vmem [shape: f32[8,1,32], index: 5, kind: input, shape index: {}]   ;;  %s2942_s6 = inlined_call_operand.vmem [shape: f32[1,8], index: 6, kind: input, shape index: {}]   ;;  %s2943_s7 = inlined_call_operand.vmem [shape: f32[2,2], index: 7, kind: input, shape index: {}]   ;;  %s2944_s8 = inlined_call_operand.hbm [shape: f32[2,8], index: 8, kind: output, shape index: {}]  }
   0x1   :  { %14 = vsyncpa [#allocation6], 0 }
   0x2   :  { %15 = vsyncpa [#allocation4], 0  ;;  %s2547_s27 = smov [#allocation2]  }
   0x3   :  { %s23_s28 = sshll.u32 %s2547_s27, 4  ;;  %s24_s28 = int_to_ptr.vmem [resolvable:$true] %s23_s28 }
   0x4   :  { %s2489_s29 = scalar_lea.vmem %s24_s28, 4096  ;;  %p2494_p1 = scmp.lt.s32.totalorder %s24_s28, %s24_s28 }
   0x5   :  { %p2490_p0 = scmp.ne.s32.totalorder %s24_s28, %s2489_s29  ;;  %p2495_p2 = scmp.lt.s32.totalorder %s2489_s29, %s2489_s29 }
   0x7   :  { %p2496_p3 = por %p2495_p2, %p2494_p1 }
   0x9   :  { %p2497_p4 = pnand %p2496_p3, %p2490_p0 }
   0xb   :  { %2500 = shalt.err (!%p2497_p4)
}
   0xc   :  { %s2548_s30 = smov 128   ;;  %s2549_s9 = smov 8  }
   0xd   :  { %29 = dma.hbm_to_vmem [thread:$0]  %s2937_s1, 4096, %s24_s28, [#allocation3], %s2548_s30, %s2548_s30, %s2549_s9  }
   0xe   :  { %s2550_s12 = smov [#allocation5]  }
   0xf   :  { %s37_s13 = sshll.u32 %s2550_s12, 4  ;;  %s38_s13 = int_to_ptr.vmem [resolvable:$true] %s37_s13 }
  0x10   :  { %s2509_s14 = scalar_lea.vmem %s38_s13, 4096  ;;  %p2514_p6 = scmp.lt.s32.totalorder %s38_s13, %s38_s13 }
  0x11   :  { %p2510_p5 = scmp.ne.s32.totalorder %s38_s13, %s2509_s14  ;;  %p2515_p7 = scmp.lt.s32.totalorder %s2509_s14, %s2509_s14 }
  0x13   :  { %p2516_p8 = por %p2515_p7, %p2514_p6 }
  0x15   :  { %p2517_p9 = pnand %p2516_p8, %p2510_p5 }
  0x17   :  { %2520 = shalt.err (!%p2517_p9)
}
  0x18   :  { %43 = dma.hbm_to_vmem [thread:$0]  %s2939_s3, 4096, %s38_s13, [#allocation6], %s2548_s30, %s2548_s30, %s2549_s9  }
  0x19   :  { %2541 = dma.done.wait [#allocation3], 4096  }
  0x1a   :  { %2542 = vsyncadd [#allocation3], 4294963200 }
  0x1b   :  { %2543 = dma.done.wait [#allocation6], 4096  }
  0x1c   :  { %2544 = vsyncadd [#allocation6], 4294963200  ;;  %v2551_v0 = vmov 0.0   ;;  %vm2552_vm0 = vmmov 0   ;;  %v69_v1 = vld [vmem:[#allocation2 + $0x18] sm:$0xff]  ;;  %v68_v3 = vld [vmem:[#allocation2 + $0x10] sm:$0xff] }
  0x1d   :  { %2158 = vmatprep.subr.mxu0 %v2551_v0  ;;  %2169 = vmatprep.subr.mxu1 %v2551_v0  ;;  %v73_v2 = vld [vmem:[#allocation2 + $0x38] sm:$0xff]  ;;  %v72_v4 = vld [vmem:[#allocation2 + $0x30] sm:$0xff]  ;;  %v67_v5 = vld [vmem:[#allocation2 + $0x8] sm:$0xff]  ;;  %vm154_vm1 = vcmask 261120   ;;  %s2553_s16 = smov 64   ;;  %s2555_s23 = smov 32  }
  0x1e   :  { %2166 = vmatprep.mubr.msk.f32.mxu0 %vm2552_vm0, %v2551_v0  ;;  %2177 = vmatprep.mubr.msk.f32.mxu1 %vm2552_vm0, %v2551_v0  ;;  %v71_v6 = vld [vmem:[#allocation2 + $0x28] sm:$0xff]  ;;  %v66_v7 = vld [vmem:[#allocation2] sm:$0xff]  ;;  %v77_v11 = vld [vmem:[#allocation2 + $0x58] sm:$0xff]  ;;  %vm1827_vm2 = vcmask 254976   ;;  %vm1902_vm3 = vcmask 1041409   ;;  %vm1904_vm4 = vcmask 1042434  }
  0x1f   :  { %2159 = vmatpush3.msra.mxu0 %v69_v1  ;;  %2170 = vmatpush3.msra.mxu1 %v73_v2  ;;  %v70_v8 = vld [vmem:[#allocation2 + $0x20] sm:$0xff]  ;;  %v81_v12 = vld [vmem:[#allocation2 + $0x78] sm:$0xff]  ;;  %v76_v13 = vld [vmem:[#allocation2 + $0x50] sm:$0xff]  ;;  %vm1906_vm5 = vcmask 1043459   ;;  %vm1908_vm6 = vcmask 1044484   ;;  %vm1910_vm7 = vcmask 1045509  }
  0x20   :  { %2160 = vmatprep.subr.mxu0 %v2551_v0  ;;  %2171 = vmatprep.subr.mxu1 %v2551_v0  ;;  %v58_v9 = vld [vmem:[%s2936_s0] sm:$0x3]  ;;  %v59_v10 = vld [vmem:[%s2936_s0 + $0x2] sm:$0x3]  ;;  %v80_v14 = vld [vmem:[#allocation2 + $0x70] sm:$0xff]  ;;  %vm1912_vm8 = vcmask 1046534  }
  0x21   :  { %2161 = vmatpush3.msra.mxu0 %v68_v3  ;;  %2172 = vmatpush3.msra.mxu1 %v72_v4  ;;  %v75_v15 = vld [vmem:[#allocation2 + $0x48] sm:$0xff]  ;;  %v74_v17 = vld [vmem:[#allocation2 + $0x40] sm:$0xff]  ;;  %v85_v21 = vld [vmem:[#allocation2 + $0x98] sm:$0xff]  ;;  %vm1914_vm9 = vcmask 1047559   ;;  %vm1916_vm10 = vcmask 15360   ;;  %s2556_s9 = smov [#allocation7]  }
  0x22   :  { %2162 = vmatprep.subr.mxu0 %v2551_v0  ;;  %2173 = vmatprep.subr.mxu1 %v2551_v0  ;;  %v79_v16 = vld [vmem:[#allocation2 + $0x68] sm:$0xff]  ;;  %v78_v18 = vld [vmem:[#allocation2 + $0x60] sm:$0xff]  ;;  %v89_v22 = vld [vmem:[#allocation2 + $0xb8] sm:$0xff]  ;;  %s2006_s10 = sshll.u32 %s2556_s9, 4  ;;  %vm1998_vm11 = vcmask 58368   ;;  %s2007_s10 = int_to_ptr.vmem [resolvable:$true] %s2006_s10 }
  0x23   :  { %2163 = vmatpush3.msra.mxu0 %v67_v5  ;;  %2174 = vmatpush3.msra.mxu1 %v71_v6  ;;  %v60_v19 = vld [vmem:[%s2936_s0 + $0x4] sm:$0x3]  ;;  %v61_v20 = vld [vmem:[%s2936_s0 + $0x6] sm:$0x3]  ;;  %v84_v23 = vld [vmem:[#allocation2 + $0x90] sm:$0xff]  ;;  %p2526_p11 = scmp.lt.s32.totalorder %s2007_s10, %s2007_s10 }
  0x24   :  { %2164 = vmatprep.subr.mxu0 %v2551_v0  ;;  %2175 = vmatprep.subr.mxu1 %v2551_v0  ;;  %v88_v24 = vld [vmem:[#allocation2 + $0xb0] sm:$0xff]  ;;  %v83_v25 = vld [vmem:[#allocation2 + $0x88] sm:$0xff]  ;;  %v82_v27 = vld [vmem:[#allocation2 + $0x80] sm:$0xff] }
  0x25   :  { %2165 = vmatpush3.msra.mxu0 %v66_v7  ;;  %2176 = vmatpush3.msra.mxu1 %v70_v8  ;;  %v87_v26 = vld [vmem:[#allocation2 + $0xa8] sm:$0xff]  ;;  %v86_v28 = vld [vmem:[#allocation2 + $0xa0] sm:$0xff]  ;;  %v93_v31 = vld [vmem:[#allocation2 + $0xd8] sm:$0xff] }
  0x26   :  { %2167 = vmatmul.mubr.msk.f32.vlgmr.msra.gmra.mxu0 %vm154_vm1, %v58_v9  ;;  %2180 = vmatprep.subr.mxu0 %v2551_v0  ;;  %v62_v29 = vld [vmem:[%s2936_s0 + $0x8] sm:$0x3]  ;;  %v63_v30 = vld [vmem:[%s2936_s0 + $0xa] sm:$0x3]  ;;  %v97_v32 = vld [vmem:[#allocation2 + $0xf8] sm:$0xff] }
  0x27   :  { %2191 = vmatprep.subr.mxu1 %v2551_v0  ;;  %2178 = vmatmul.mubr.msk.f32.vlgmr.msra.gmra.mxu1 %vm154_vm1, %v59_v10  ;;  %v92_v33 = vld [vmem:[#allocation2 + $0xd0] sm:$0xff]  ;;  %v91_v35 = vld [vmem:[#allocation2 + $0xc8] sm:$0xff]  ;;  %v90_v37 = vld [vmem:[#allocation2 + $0xc0] sm:$0xff] }
  0x28   :  { %2181 = vmatpush3.msra.mxu0 %v77_v11  ;;  %2192 = vmatpush3.msra.mxu1 %v81_v12  ;;  %v96_v34 = vld [vmem:[#allocation2 + $0xf0] sm:$0xff]  ;;  %v95_v36 = vld [vmem:[#allocation2 + $0xe8] sm:$0xff]  ;;  %v94_v38 = vld [vmem:[#allocation2 + $0xe0] sm:$0xff] }
  0x29   :  { %2182 = vmatprep.subr.mxu0 %v2551_v0  ;;  %2193 = vmatprep.subr.mxu1 %v2551_v0  ;;  %v64_v39 = vld [vmem:[%s2936_s0 + $0xc] sm:$0x3]  ;;  %v65_v40 = vld [vmem:[%s2936_s0 + $0xe] sm:$0x3]  ;;  %v2016_v41 = vld [vmem:[%s2938_s2] ss:$0 sm:$0xff] }
  0x2a   :  { %2183 = vmatpush3.msra.mxu0 %v76_v13  ;;  %2194 = vmatpush3.msra.mxu1 %v80_v14  ;;  %v2017_v42 = vld [vmem:[%s2938_s2 + $0x1] ss:$0 sm:$0xff]  ;;  %v2018_v49 = vld [vmem:[%s2938_s2 + $0x2] ss:$0 sm:$0xff]  ;;  %v2019_v51 = vld [vmem:[%s2938_s2 + $0x3] ss:$0 sm:$0xff] }
  0x2b   :  { %2184 = vmatprep.subr.mxu0 %v2551_v0  ;;  %2195 = vmatprep.subr.mxu1 %v2551_v0  ;;  %v2020_v59 = vld [vmem:[%s2938_s2 + $0x4] ss:$0 sm:$0xff]  ;;  %v2021_v60 = vld [vmem:[%s2938_s2 + $0x5] ss:$0 sm:$0xff]  ;;  %v2022_v6 = vld [vmem:[%s2938_s2 + $0x6] ss:$0 sm:$0xff] }
  0x2c   :  { %2185 = vmatpush3.msra.mxu0 %v75_v15  ;;  %2196 = vmatpush3.msra.mxu1 %v79_v16  ;;  %v2023_v7 = vld [vmem:[%s2938_s2 + $0x7] ss:$0 sm:$0xff]  ;;  %s2554_s2 = smov 96  }
  0x2d   :  { %2186 = vmatprep.subr.mxu0 %v2551_v0  ;;  %2197 = vmatprep.subr.mxu1 %v2551_v0 }
  0x2e   :  { %2187 = vmatpush3.msra.mxu0 %v74_v17  ;;  %2188 = vmatprep.mubr.msk.f32.mxu0 %vm2552_vm0, %v2551_v0 }
  0x2f   :  { %2198 = vmatpush3.msra.mxu1 %v78_v18  ;;  %2189 = vmatmul.mubr.msk.f32.vlgmr.msra.gmra.mxu0 %vm154_vm1, %v60_v19 }
  0x30   :  { %2199 = vmatprep.mubr.msk.f32.mxu1 %vm2552_vm0, %v2551_v0  ;;  %2202 = vmatprep.subr.mxu0 %v2551_v0 }
  0x31   :  { %2213 = vmatprep.subr.mxu1 %v2551_v0  ;;  %2200 = vmatmul.mubr.msk.f32.vlgmr.msra.gmra.mxu1 %vm154_vm1, %v61_v20 }
  0x32   :  { %2203 = vmatpush3.msra.mxu0 %v85_v21  ;;  %2214 = vmatpush3.msra.mxu1 %v89_v22 }
  0x33   :  { %2204 = vmatprep.subr.mxu0 %v2551_v0  ;;  %2215 = vmatprep.subr.mxu1 %v2551_v0 }
  0x34   :  { %2205 = vmatpush3.msra.mxu0 %v84_v23  ;;  %2216 = vmatpush3.msra.mxu1 %v88_v24 }
  0x35   :  { %2206 = vmatprep.subr.mxu0 %v2551_v0  ;;  %2217 = vmatprep.subr.mxu1 %v2551_v0 }
  0x36   :  { %2207 = vmatpush3.msra.mxu0 %v83_v25  ;;  %2218 = vmatpush3.msra.mxu1 %v87_v26 }
  0x37   :  { %2208 = vmatprep.subr.mxu0 %v2551_v0  ;;  %2219 = vmatprep.subr.mxu1 %v2551_v0 }
  0x38   :  { %2209 = vmatpush3.msra.mxu0 %v82_v27  ;;  %2210 = vmatprep.mubr.msk.f32.mxu0 %vm2552_vm0, %v2551_v0 }
  0x39   :  { %2220 = vmatpush3.msra.mxu1 %v86_v28  ;;  %2221 = vmatprep.mubr.msk.f32.mxu1 %vm2552_vm0, %v2551_v0 }
  0x3a   :  { %2211 = vmatmul.mubr.msk.f32.vlgmr.msra.gmra.mxu0 %vm154_vm1, %v62_v29  ;;  %2222 = vmatmul.mubr.msk.f32.vlgmr.msra.gmra.mxu1 %vm154_vm1, %v63_v30 }
  0x3b   :  { %2224 = vmatprep.subr.mxu0 %v2551_v0  ;;  %2235 = vmatprep.subr.mxu1 %v2551_v0 }
  0x3c   :  { %2225 = vmatpush3.msra.mxu0 %v93_v31  ;;  %2236 = vmatpush3.msra.mxu1 %v97_v32 }
  0x3d   :  { %2226 = vmatprep.subr.mxu0 %v2551_v0  ;;  %2237 = vmatprep.subr.mxu1 %v2551_v0 }
  0x3e   :  { %2227 = vmatpush3.msra.mxu0 %v92_v33  ;;  %2238 = vmatpush3.msra.mxu1 %v96_v34 }
  0x3f   :  { %2228 = vmatprep.subr.mxu0 %v2551_v0  ;;  %2239 = vmatprep.subr.mxu1 %v2551_v0 }
  0x40   :  { %2229 = vmatpush3.msra.mxu0 %v91_v35  ;;  %2240 = vmatpush3.msra.mxu1 %v95_v36 }
  0x41   :  { %2230 = vmatprep.subr.mxu0 %v2551_v0  ;;  %2241 = vmatprep.subr.mxu1 %v2551_v0 }
  0x42   :  { %2231 = vmatpush3.msra.mxu0 %v90_v37  ;;  %2232 = vmatprep.mubr.msk.f32.mxu0 %vm2552_vm0, %v2551_v0 }
  0x43   :  { %2242 = vmatpush3.msra.mxu1 %v94_v38  ;;  %2243 = vmatprep.mubr.msk.f32.mxu1 %vm2552_vm0, %v2551_v0 }
  0x44   :  { %2233 = vmatmul.mubr.msk.f32.vlgmr.msra.gmra.mxu0 %vm154_vm1, %v64_v39  ;;  %2244 = vmatmul.mubr.msk.f32.vlgmr.msra.gmra.mxu1 %vm154_vm1, %v65_v40 }
  0x45   :  { %2246 = vmatprep.subr.mxu0 %v2551_v0  ;;  %2257 = vmatprep.subr.mxu1 %v2551_v0 }
  0x46   :  { %2254 = vmatprep.mubr.msk.f32.mxu0 %vm2552_vm0, %v2551_v0  ;;  %2265 = vmatprep.mubr.msk.f32.mxu1 %vm2552_vm0, %v2551_v0 }
  0xe6   :  { %v224_v43 = vpop.f32.mrf.mxu0 }
  0xe7   :  { %v225_v44 = vadd.f32 %v2016_v41, %v224_v43  ;;  %v297_v45 = vpop.f32.mrf.mxu1 }
  0xe8   :  { %v2168_v46 = vpop.f32.mrf.mxu0  ;;  %v298_v47 = vadd.f32 %v2017_v42, %v297_v45 }
  0xe9   :  { %2349 = vtanh.f32 %v225_v44  ;;  %v2179_v48 = vpop.f32.mrf.mxu1  ;;  %v2032_v18 = vmul.f32 -1.442695, %v225_v44 }
  0xea   :  { %2351 = vtanh.f32 %v298_v47  ;;  %v2033_v19 = vmul.f32 -1.442695, %v298_v47 }
  0xef   :  { %v370_v50 = vpop.f32.mrf.mxu0 }
  0xf0   :  { %v371_v52 = vadd.f32 %v2018_v49, %v370_v50 }
  0xf1   :  { %v2190_v53 = vpop.f32.mrf.mxu0  ;;  %v443_v54 = vpop.f32.mrf.mxu1 }
  0xf2   :  { %2353 = vtanh.f32 %v371_v52  ;;  %v444_v55 = vadd.f32 %v2019_v51, %v443_v54  ;;  %v2034_v20 = vmul.f32 -1.442695, %v371_v52 }
  0xf3   :  { %v2201_v56 = vpop.f32.mrf.mxu1 }
  0xf4   :  { %2355 = vtanh.f32 %v444_v55  ;;  %v2035_v21 = vmul.f32 -1.442695, %v444_v55 }
  0xf6   :  { %v2350_v57 = vpop.eup %2349 }
  0xf7   :  { %803 = vrot.lane.b32.xlu0 %v2350_v57, %s2553_s16  ;;  %v2352_v58 = vpop.eup %2351 }
  0xfa   :  { %v516_v61 = vpop.f32.mrf.mxu0  ;;  %v589_v62 = vpop.f32.mrf.mxu1 }
  0xfb   :  { %v517_v63 = vadd.f32 %v2020_v59, %v516_v61  ;;  %v590_v1 = vadd.f32 %v2021_v60, %v589_v62  ;;  %805 = vrot.lane.b32.xlu0 %v2352_v58, %s2553_s16 }
  0xfc   :  { %v2212_v2 = vpop.f32.mrf.mxu0  ;;  %v2223_v3 = vpop.f32.mrf.mxu1 }
  0xfd   :  { %2357 = vtanh.f32 %v517_v63  ;;  %v2036_v23 = vmul.f32 -1.442695, %v517_v63  ;;  %v2037_v26 = vmul.f32 -1.442695, %v590_v1 }
  0xfe   :  { %2359 = vtanh.f32 %v590_v1 }
  0xff   :  { %v2354_v4 = vpop.eup %2353 }
 0x100   :  { %807 = vrot.lane.b32.xlu1 %v2354_v4, %s2553_s16 }
 0x101   :  { %v2356_v5 = vpop.eup %2355 }
 0x104   :  { %v662_v8 = vpop.f32.mrf.mxu0  ;;  %v735_v9 = vpop.f32.mrf.mxu1  ;;  %809 = vrot.lane.b32.xlu1 %v2356_v5, %s2553_s16 }
 0x105   :  { %v663_v10 = vadd.f32 %v2022_v6, %v662_v8  ;;  %v736_v11 = vadd.f32 %v2023_v7, %v735_v9  ;;  %v886_v9 = vld [vmem:[#allocation5 + $0x18] sm:$0xff] }
 0x106   :  { %v2234_v12 = vpop.f32.mrf.mxu0  ;;  %v2245_v13 = vpop.f32.mrf.mxu1  ;;  %2247 = vmatpush3.msra.mxu0 %v886_v9 }
 0x107   :  { %2361 = vtanh.f32 %v663_v10  ;;  %v2038_v31 = vmul.f32 -1.442695, %v663_v10  ;;  %v2039_v32 = vmul.f32 -1.442695, %v736_v11  ;;  %v885_v10 = vld [vmem:[#allocation5 + $0x10] sm:$0xff]  ;;  %2248 = vmatprep.subr.mxu0 %v2551_v0  ;;  %v884_v13 = vld [vmem:[#allocation5 + $0x8] sm:$0xff] }
 0x108   :  { %2363 = vtanh.f32 %v736_v11  ;;  %v890_v11 = vld [vmem:[#allocation5 + $0x38] sm:$0xff]  ;;  %v889_v12 = vld [vmem:[#allocation5 + $0x30] sm:$0xff]  ;;  %2249 = vmatpush3.msra.mxu0 %v885_v10 }
 0x109   :  { %2365 = vpow2.f32 %v2032_v18  ;;  %2258 = vmatpush3.msra.mxu1 %v890_v11  ;;  %2250 = vmatprep.subr.mxu0 %v2551_v0  ;;  %v887_v18 = vld [vmem:[#allocation5 + $0x20] sm:$0xff] }
 0x10a   :  { %v2358_v14 = vpop.eup %2357  ;;  %2367 = vpow2.f32 %v2033_v19  ;;  %2259 = vmatprep.subr.mxu1 %v2551_v0  ;;  %2251 = vmatpush3.msra.mxu0 %v884_v13 }
 0x10b   :  { %v2360_v15 = vpop.eup %2359  ;;  %811 = vrot.lane.b32.xlu0 %v2358_v14, %s2553_s16  ;;  %2369 = vpow2.f32 %v2034_v20  ;;  %2260 = vmatpush3.msra.mxu1 %v889_v12  ;;  %v883_v14 = vld [vmem:[#allocation5] sm:$0xff] }
 0x10c   :  { %813 = vrot.lane.b32.xlu1 %v2360_v15, %s2553_s16  ;;  %2371 = vpow2.f32 %v2035_v21  ;;  %2261 = vmatprep.subr.mxu1 %v2551_v0 }
 0x10d   :  { %2373 = vpow2.f32 %v2036_v23  ;;  %2252 = vmatprep.subr.mxu0 %v2551_v0 }
 0x10e   :  { %2253 = vmatpush3.msra.mxu0 %v883_v14 }
 0x10f   :  { %2268 = vmatprep.subr.mxu0 %v2551_v0 }
 0x114   :  { %v2362_v16 = vpop.eup %2361 }
 0x115   :  { %v2364_v17 = vpop.eup %2363  ;;  %815 = vrot.lane.b32.xlu0 %v2362_v16, %s2553_s16 }
 0x116   :  { %817 = vrot.lane.b32.xlu1 %v2364_v17, %s2553_s16  ;;  %v2366_v22 = vpop.eup %2365  ;;  %v888_v17 = vld [vmem:[#allocation5 + $0x28] sm:$0xff] }
 0x117   :  { %v763_v24 = vadd.f32 1.0, %v2366_v22  ;;  %v2368_v25 = vpop.eup %2367  ;;  %2262 = vmatpush3.msra.mxu1 %v888_v17 }
 0x118   :  { %v764_v27 = vadd.f32 1.0, %v2368_v25  ;;  %v2370_v28 = vpop.eup %2369  ;;  %2263 = vmatprep.subr.mxu1 %v2551_v0 }
 0x119   :  { %2375 = vrcp.f32 %v763_v24  ;;  %v765_v29 = vadd.f32 1.0, %v2370_v28  ;;  %v2372_v30 = vpop.eup %2371  ;;  %2264 = vmatpush3.msra.mxu1 %v887_v18 }
 0x11a   :  { %2377 = vpow2.f32 %v2037_v26  ;;  %v766_v33 = vadd.f32 1.0, %v2372_v30  ;;  %v2374_v34 = vpop.eup %2373  ;;  %2279 = vmatprep.subr.mxu1 %v2551_v0 }
 0x11b   :  { %2379 = vrcp.f32 %v764_v27  ;;  %v767_v39 = vadd.f32 1.0, %v2374_v34 }
 0x11c   :  { %2381 = vrcp.f32 %v765_v29 }
 0x11d   :  { %2383 = vpow2.f32 %v2038_v31 }
 0x11e   :  { %2385 = vpow2.f32 %v2039_v32 }
 0x11f   :  { %2387 = vrcp.f32 %v766_v33 }
 0x126   :  { %v2726_v35 = vpop.eup %2375 }
 0x127   :  { %v2378_v37 = vpop.eup %2377 }
 0x128   :  { %v2729_v40 = vpop.eup %2379  ;;  %v768_v41 = vadd.f32 1.0, %v2378_v37  ;;  %v893_v37 = vld [vmem:[#allocation5 + $0x50] sm:$0xff] }
 0x129   :  { %v2732_v44 = vpop.eup %2381 }
 0x12a   :  { %v2384_v46 = vpop.eup %2383 }
 0x12b   :  { %v2386_v48 = vpop.eup %2385  ;;  %v769_v50 = vadd.f32 1.0, %v2384_v46  ;;  %v895_v46 = vld [vmem:[#allocation5 + $0x60] sm:$0xff] }
 0x12c   :  { %v2735_v49 = vpop.eup %2387  ;;  %v770_v52 = vadd.f32 1.0, %v2386_v48  ;;  %v906_v48 = vld [vmem:[#allocation5 + $0xb8] sm:$0xff] }
 0x169   :  { %v804_v36 = vpop.permute.xlu0 %803 }
 0x16a   :  { %v827_v38 = vmul.f32 %v2726_v35, %v804_v36 }
 0x16c   :  { %2389 = vtanh.f32 %v827_v38  ;;  %v898_v38 = vld [vmem:[#allocation5 + $0x78] sm:$0xff] }
 0x16d   :  { %v806_v42 = vpop.permute.xlu0 %805  ;;  %2391 = vrcp.f32 %v767_v39  ;;  %v892_v39 = vld [vmem:[#allocation5 + $0x48] sm:$0xff] }
 0x16e   :  { %v828_v43 = vmul.f32 %v2729_v40, %v806_v42  ;;  %v891_v42 = vld [vmem:[#allocation5 + $0x40] sm:$0xff] }
 0x170   :  { %2393 = vtanh.f32 %v828_v43  ;;  %v896_v43 = vld [vmem:[#allocation5 + $0x68] sm:$0xff] }
 0x171   :  { %2395 = vrcp.f32 %v768_v41  ;;  %v897_v41 = vld [vmem:[#allocation5 + $0x70] sm:$0xff] }
 0x172   :  { %v808_v45 = vpop.permute.xlu1 %807 }
 0x173   :  { %v829_v47 = vmul.f32 %v2732_v44, %v808_v45 }
 0x175   :  { %2397 = vtanh.f32 %v829_v47  ;;  %v901_v47 = vld [vmem:[#allocation5 + $0x90] sm:$0xff] }
 0x176   :  { %v810_v51 = vpop.permute.xlu1 %809 }
 0x177   :  { %v830_v53 = vmul.f32 %v2735_v49, %v810_v51  ;;  %v905_v51 = vld [vmem:[#allocation5 + $0xb0] sm:$0xff] }
 0x179   :  { %v2390_v54 = vpop.eup %2389  ;;  %2399 = vtanh.f32 %v830_v53  ;;  %v904_v53 = vld [vmem:[#allocation5 + $0xa8] sm:$0xff] }
 0x17a   :  { %2401 = vrcp.f32 %v769_v50  ;;  %851 = vrot.lane.b32.xlu0 %v2390_v54, %s2554_s2  ;;  %v2739_v55 = vpop.eup %2391  ;;  %v900_v50 = vld [vmem:[#allocation5 + $0x88] sm:$0xff]  ;;  %v903_v54 = vld [vmem:[#allocation5 + $0xa0] sm:$0xff] }
 0x17b   :  { %2403 = vrcp.f32 %v770_v52  ;;  %v899_v52 = vld [vmem:[#allocation5 + $0x80] sm:$0xff] }
 0x17d   :  { %v2394_v56 = vpop.eup %2393  ;;  %v812_v57 = vpop.permute.xlu0 %811 }
 0x17e   :  { %v2741_v58 = vpop.eup %2395  ;;  %v814_v59 = vpop.permute.xlu1 %813  ;;  %v831_v60 = vmul.f32 %v2739_v55, %v812_v57  ;;  %853 = vrot.lane.b32.xlu1 %v2394_v56, %s2554_s2  ;;  %v909_v57 = vld [vmem:[#allocation5 + $0xd0] sm:$0xff] }
 0x17f   :  { %v832_v61 = vmul.f32 %v2741_v58, %v814_v59  ;;  %v914_v59 = vld [vmem:[#allocation5 + $0xf8] sm:$0xff] }
 0x180   :  { %2405 = vtanh.f32 %v831_v60  ;;  %v908_v60 = vld [vmem:[#allocation5 + $0xc8] sm:$0xff] }
 0x181   :  { %2407 = vtanh.f32 %v832_v61  ;;  %v913_v61 = vld [vmem:[#allocation5 + $0xf0] sm:$0xff] }
 0x182   :  { %v2398_v62 = vpop.eup %2397 }
 0x183   :  { %855 = vrot.lane.b32.xlu0 %v2398_v62, %s2554_s2  ;;  %v907_v62 = vld [vmem:[#allocation5 + $0xc0] sm:$0xff] }
 0x186   :  { %v2400_v63 = vpop.eup %2399 }
 0x187   :  { %v2402_v1 = vpop.eup %2401  ;;  %v816_v2 = vpop.permute.xlu0 %815  ;;  %857 = vrot.lane.b32.xlu1 %v2400_v63, %s2554_s2  ;;  %v912_v63 = vld [vmem:[#allocation5 + $0xe8] sm:$0xff] }
 0x188   :  { %v2404_v3 = vpop.eup %2403  ;;  %v818_v4 = vpop.permute.xlu1 %817  ;;  %v833_v5 = vmul.f32 %v2402_v1, %v816_v2 }
 0x189   :  { %v834_v6 = vmul.f32 %v2404_v3, %v818_v4  ;;  %v2040_v4 = vld [vmem:[%s2940_s4] ss:$0 sm:$0xff] }
 0x18a   :  { %2409 = vtanh.f32 %v833_v5 }
 0x18b   :  { %2411 = vtanh.f32 %v834_v6 }
 0x18d   :  { %v2406_v7 = vpop.eup %2405 }
 0x18e   :  { %v2408_v8 = vpop.eup %2407  ;;  %859 = vrot.lane.b32.xlu0 %v2406_v7, %s2554_s2 }
 0x18f   :  { %861 = vrot.lane.b32.xlu1 %v2408_v8, %s2554_s2  ;;  %v2041_v8 = vld [vmem:[%s2940_s4 + $0x1] ss:$0 sm:$0xff] }
 0x197   :  { %v2410_v15 = vpop.eup %2409 }
 0x198   :  { %v2412_v16 = vpop.eup %2411  ;;  %863 = vrot.lane.b32.xlu0 %v2410_v15, %s2554_s2  ;;  %v2043_v15 = vld [vmem:[%s2940_s4 + $0x3] ss:$0 sm:$0xff] }
 0x199   :  { %865 = vrot.lane.b32.xlu1 %v2412_v16, %s2554_s2 }
 0x1ec   :  { %v852_v19 = vpop.permute.xlu0 %851 }
 0x1ed   :  { %v875_v20 = vmul.f32 %v2726_v35, %v852_v19  ;;  %v894_v35 = vld [vmem:[#allocation5 + $0x58] sm:$0xff] }
 0x1ef   :  { %972 = vrot.lane.b32.xlu0 %v875_v20, %s2555_s23  ;;  %v2044_v20 = vld [vmem:[%s2940_s4 + $0x4] ss:$0 sm:$0xff] }
 0x1f0   :  { %v854_v21 = vpop.permute.xlu1 %853 }
 0x1f1   :  { %v876_v22 = vmul.f32 %v2729_v40, %v854_v21 }
 0x1f3   :  { %1047 = vrot.lane.b32.xlu1 %v876_v22, %s2555_s23 }
 0x1f5   :  { %v856_v23 = vpop.permute.xlu0 %855 }
 0x1f6   :  { %v877_v24 = vmul.f32 %v2732_v44, %v856_v23  ;;  %v902_v44 = vld [vmem:[#allocation5 + $0x98] sm:$0xff] }
 0x1f8   :  { %1122 = vrot.lane.b32.xlu0 %v877_v24, %s2555_s23  ;;  %v2045_v24 = vld [vmem:[%s2940_s4 + $0x5] ss:$0 sm:$0xff] }
 0x1f9   :  { %v858_v25 = vpop.permute.xlu1 %857 }
 0x1fa   :  { %v878_v26 = vmul.f32 %v2735_v49, %v858_v25 }
 0x1fc   :  { %1197 = vrot.lane.b32.xlu1 %v878_v26, %s2555_s23 }
 0x200   :  { %v860_v27 = vpop.permute.xlu0 %859 }
 0x201   :  { %v862_v28 = vpop.permute.xlu1 %861  ;;  %v879_v29 = vmul.f32 %v2739_v55, %v860_v27  ;;  %v910_v55 = vld [vmem:[#allocation5 + $0xd8] sm:$0xff] }
 0x202   :  { %v880_v30 = vmul.f32 %v2741_v58, %v862_v28 }
 0x203   :  { %1272 = vrot.lane.b32.xlu0 %v879_v29, %s2555_s23 }
 0x204   :  { %1347 = vrot.lane.b32.xlu1 %v880_v30, %s2555_s23  ;;  %v2046_v30 = vld [vmem:[%s2940_s4 + $0x6] ss:$0 sm:$0xff] }
 0x20a   :  { %v864_v31 = vpop.permute.xlu0 %863 }
 0x20b   :  { %v866_v32 = vpop.permute.xlu1 %865  ;;  %v881_v33 = vmul.f32 %v2402_v1, %v864_v31  ;;  %v911_v1 = vld [vmem:[#allocation5 + $0xe0] sm:$0xff] }
 0x20c   :  { %v882_v34 = vmul.f32 %v2404_v3, %v866_v32 }
 0x20d   :  { %1422 = vrot.lane.b32.xlu0 %v881_v33, %s2555_s23  ;;  %v2047_v33 = vld [vmem:[%s2940_s4 + $0x7] ss:$0 sm:$0xff] }
 0x20e   :  { %1497 = vrot.lane.b32.xlu1 %v882_v34, %s2555_s23 }
 0x261   :  { %v973_v36 = vpop.permute.xlu0 %972 }
 0x262   :  { %2255 = vmatmul.mubr.msk.f32.vlgmr.msra.gmra.mxu0 %vm154_vm1, %v973_v36 }
 0x263   :  { %2269 = vmatpush3.msra.mxu0 %v894_v35  ;;  %2276 = vmatprep.mubr.msk.f32.mxu0 %vm2552_vm0, %v2551_v0 }
 0x264   :  { %2270 = vmatprep.subr.mxu0 %v2551_v0 }
 0x265   :  { %v1048_v40 = vpop.permute.xlu1 %1047  ;;  %2271 = vmatpush3.msra.mxu0 %v893_v37 }
 0x266   :  { %2266 = vmatmul.mubr.msk.f32.vlgmr.msra.gmra.mxu1 %vm154_vm1, %v1048_v40  ;;  %2272 = vmatprep.subr.mxu0 %v2551_v0 }
 0x267   :  { %2280 = vmatpush3.msra.mxu1 %v898_v38  ;;  %2273 = vmatpush3.msra.mxu0 %v892_v39 }
 0x268   :  { %2281 = vmatprep.subr.mxu1 %v2551_v0  ;;  %2274 = vmatprep.subr.mxu0 %v2551_v0 }
 0x269   :  { %2282 = vmatpush3.msra.mxu1 %v897_v41  ;;  %2275 = vmatpush3.msra.mxu0 %v891_v42  ;;  %v2064_v42 = vld [vmem:[%s2941_s5] ss:$0 sm:$0xff] }
 0x26a   :  { %2283 = vmatprep.subr.mxu1 %v2551_v0  ;;  %v1123_v45 = vpop.permute.xlu0 %1122  ;;  %2290 = vmatprep.subr.mxu0 %v2551_v0 }
 0x26b   :  { %2277 = vmatmul.mubr.msk.f32.vlgmr.msra.gmra.mxu0 %vm154_vm1, %v1123_v45  ;;  %2284 = vmatpush3.msra.mxu1 %v896_v43  ;;  %v2066_v45 = vld [vmem:[%s2941_s5 + $0x2] ss:$0 sm:$0xff] }
 0x26c   :  { %2285 = vmatprep.subr.mxu1 %v2551_v0  ;;  %2291 = vmatpush3.msra.mxu0 %v902_v44  ;;  %v2065_v44 = vld [vmem:[%s2941_s5 + $0x1] ss:$0 sm:$0xff] }
 0x26d   :  { %2286 = vmatpush3.msra.mxu1 %v895_v46  ;;  %2292 = vmatprep.subr.mxu0 %v2551_v0  ;;  %v2067_v46 = vld [vmem:[%s2941_s5 + $0x3] ss:$0 sm:$0xff] }
 0x26e   :  { %2287 = vmatprep.mubr.msk.f32.mxu1 %vm2552_vm0, %v2551_v0  ;;  %2301 = vmatprep.subr.mxu1 %v2551_v0  ;;  %v1198_v49 = vpop.permute.xlu1 %1197 }
 0x26f   :  { %2293 = vmatpush3.msra.mxu0 %v901_v47  ;;  %2288 = vmatmul.mubr.msk.f32.vlgmr.msra.gmra.mxu1 %vm154_vm1, %v1198_v49  ;;  %v2068_v47 = vld [vmem:[%s2941_s5 + $0x4] ss:$0 sm:$0xff] }
 0x270   :  { %2294 = vmatprep.subr.mxu0 %v2551_v0  ;;  %2302 = vmatpush3.msra.mxu1 %v906_v48 }
 0x271   :  { %2295 = vmatpush3.msra.mxu0 %v900_v50  ;;  %2303 = vmatprep.subr.mxu1 %v2551_v0 }
 0x272   :  { %2296 = vmatprep.subr.mxu0 %v2551_v0  ;;  %2304 = vmatpush3.msra.mxu1 %v905_v51 }
 0x273   :  { %2305 = vmatprep.subr.mxu1 %v2551_v0  ;;  %2297 = vmatpush3.msra.mxu0 %v899_v52 }
 0x274   :  { %2298 = vmatprep.mubr.msk.f32.mxu0 %vm2552_vm0, %v2551_v0  ;;  %2306 = vmatpush3.msra.mxu1 %v904_v53 }
 0x275   :  { %v1273_v56 = vpop.permute.xlu0 %1272  ;;  %2312 = vmatprep.subr.mxu0 %v2551_v0  ;;  %2307 = vmatprep.subr.mxu1 %v2551_v0 }
 0x276   :  { %2299 = vmatmul.mubr.msk.f32.vlgmr.msra.gmra.mxu0 %vm154_vm1, %v1273_v56  ;;  %2308 = vmatpush3.msra.mxu1 %v903_v54  ;;  %v1348_v58 = vpop.permute.xlu1 %1347 }
 0x277   :  { %2313 = vmatpush3.msra.mxu0 %v910_v55  ;;  %2309 = vmatprep.mubr.msk.f32.mxu1 %vm2552_vm0, %v2551_v0 }
 0x278   :  { %2314 = vmatprep.subr.mxu0 %v2551_v0  ;;  %2310 = vmatmul.mubr.msk.f32.vlgmr.msra.gmra.mxu1 %vm154_vm1, %v1348_v58 }
 0x279   :  { %2315 = vmatpush3.msra.mxu0 %v909_v57  ;;  %2323 = vmatprep.subr.mxu1 %v2551_v0 }
 0x27a   :  { %2316 = vmatprep.subr.mxu0 %v2551_v0  ;;  %2324 = vmatpush3.msra.mxu1 %v914_v59 }
 0x27b   :  { %2317 = vmatpush3.msra.mxu0 %v908_v60  ;;  %2325 = vmatprep.subr.mxu1 %v2551_v0 }
 0x27c   :  { %2318 = vmatprep.subr.mxu0 %v2551_v0  ;;  %2326 = vmatpush3.msra.mxu1 %v913_v61 }
 0x27d   :  { %2327 = vmatprep.subr.mxu1 %v2551_v0  ;;  %2319 = vmatpush3.msra.mxu0 %v907_v62 }
 0x27e   :  { %2320 = vmatprep.mubr.msk.f32.mxu0 %vm2552_vm0, %v2551_v0  ;;  %2328 = vmatpush3.msra.mxu1 %v912_v63 }
 0x27f   :  { %v1423_v2 = vpop.permute.xlu0 %1422  ;;  %2329 = vmatprep.subr.mxu1 %v2551_v0  ;;  %2331 = vmatprep.mubr.msk.f32.mxu1 %vm2552_vm0, %v2551_v0 }
 0x280   :  { %v1498_v3 = vpop.permute.xlu1 %1497  ;;  %2321 = vmatmul.mubr.msk.f32.vlgmr.msra.gmra.mxu0 %vm154_vm1, %v1423_v2  ;;  %2330 = vmatpush3.msra.mxu1 %v911_v1 }
 0x281   :  { %2332 = vmatmul.mubr.msk.f32.vlgmr.msra.gmra.mxu1 %vm154_vm1, %v1498_v3  ;;  %2334 = vmatprep.subr.mxu0 %v2551_v0 }
 0x282   :  { %2336 = vmatprep.mubr.msk.f32.mxu0 %vm2552_vm0, %v2551_v0  ;;  %v2042_v0 = vld [vmem:[%s2940_s4 + $0x2] ss:$0 sm:$0xff] }
 0x322   :  { %v1042_v5 = vpop.f32.mrf.mxu0 }
 0x323   :  { %v2822_v6 = vadd.f32 %v2040_v4, %v1042_v5 }
 0x324   :  { %v2256_v7 = vpop.f32.mrf.mxu0 }
 0x325   :  { %2413 = vtanh.f32 %v2822_v6  ;;  %v2056_v48 = vmul.f32 -1.442695, %v2822_v6 }
 0x326   :  { %v1117_v9 = vpop.f32.mrf.mxu1 }
 0x327   :  { %v1118_v10 = vadd.f32 %v2041_v8, %v1117_v9 }
 0x328   :  { %v2267_v11 = vpop.f32.mrf.mxu1 }
 0x329   :  { %2415 = vtanh.f32 %v1118_v10  ;;  %v2057_v49 = vmul.f32 -1.442695, %v1118_v10 }
 0x32b   :  { %v1192_v12 = vpop.f32.mrf.mxu0 }
 0x32c   :  { %v1193_v13 = vadd.f32 %v2042_v0, %v1192_v12 }
 0x32d   :  { %v2278_v14 = vpop.f32.mrf.mxu0 }
 0x32e   :  { %2417 = vtanh.f32 %v1193_v13  ;;  %v2058_v50 = vmul.f32 -1.442695, %v1193_v13 }
 0x32f   :  { %v1267_v16 = vpop.f32.mrf.mxu1 }
 0x330   :  { %v1268_v17 = vadd.f32 %v2043_v15, %v1267_v16 }
 0x331   :  { %v2289_v18 = vpop.f32.mrf.mxu1 }
 0x332   :  { %v2414_v19 = vpop.eup %2413  ;;  %2419 = vtanh.f32 %v1268_v17  ;;  %v2059_v51 = vmul.f32 -1.442695, %v1268_v17 }
 0x333   :  { %1635 = vrot.lane.b32.xlu0 %v2414_v19, %s2553_s16 }
 0x336   :  { %v2416_v21 = vpop.eup %2415  ;;  %v1342_v22 = vpop.f32.mrf.mxu0 }
 0x337   :  { %v1343_v23 = vadd.f32 %v2044_v20, %v1342_v22  ;;  %1637 = vrot.lane.b32.xlu1 %v2416_v21, %s2553_s16 }
 0x338   :  { %v2300_v25 = vpop.f32.mrf.mxu0  ;;  %v1417_v26 = vpop.f32.mrf.mxu1 }
 0x339   :  { %2421 = vtanh.f32 %v1343_v23  ;;  %v1418_v27 = vadd.f32 %v2045_v24, %v1417_v26  ;;  %v2060_v53 = vmul.f32 -1.442695, %v1343_v23 }
 0x33a   :  { %v2311_v28 = vpop.f32.mrf.mxu1 }
 0x33b   :  { %v2418_v29 = vpop.eup %2417  ;;  %2423 = vtanh.f32 %v1418_v27  ;;  %v2061_v57 = vmul.f32 -1.442695, %v1418_v27 }
 0x33c   :  { %1639 = vrot.lane.b32.xlu0 %v2418_v29, %s2553_s16 }
 0x33f   :  { %v2420_v31 = vpop.eup %2419 }
 0x340   :  { %v1492_v32 = vpop.f32.mrf.mxu0  ;;  %1641 = vrot.lane.b32.xlu1 %v2420_v31, %s2553_s16 }
 0x341   :  { %v1493_v34 = vadd.f32 %v2046_v30, %v1492_v32  ;;  %v1567_v35 = vpop.f32.mrf.mxu1 }
 0x342   :  { %v2322_v36 = vpop.f32.mrf.mxu0  ;;  %v1568_v37 = vadd.f32 %v2047_v33, %v1567_v35  ;;  %v2069_v33 = vld [vmem:[%s2941_s5 + $0x5] ss:$0 sm:$0xff] }
 0x343   :  { %2425 = vtanh.f32 %v1493_v34  ;;  %v2333_v38 = vpop.f32.mrf.mxu1  ;;  %v2062_v61 = vmul.f32 -1.442695, %v1493_v34 }
 0x344   :  { %2427 = vtanh.f32 %v1568_v37  ;;  %v2063_v63 = vmul.f32 -1.442695, %v1568_v37  ;;  %v2071_v37 = vld [vmem:[%s2941_s5 + $0x7] ss:$0 sm:$0xff] }
 0x345   :  { %2429 = vpow2.f32 %v2056_v48 }
 0x346   :  { %v2422_v39 = vpop.eup %2421  ;;  %2431 = vpow2.f32 %v2057_v49 }
 0x347   :  { %1643 = vrot.lane.b32.xlu0 %v2422_v39, %s2553_s16  ;;  %2433 = vpow2.f32 %v2058_v50 }
 0x348   :  { %v2424_v40 = vpop.eup %2423  ;;  %2435 = vpow2.f32 %v2059_v51 }
 0x349   :  { %1645 = vrot.lane.b32.xlu1 %v2424_v40, %s2553_s16  ;;  %2437 = vpow2.f32 %v2060_v53 }
 0x350   :  { %v2426_v41 = vpop.eup %2425 }
 0x351   :  { %1647 = vrot.lane.b32.xlu0 %v2426_v41, %s2553_s16  ;;  %v2428_v43 = vpop.eup %2427 }
 0x352   :  { %1649 = vrot.lane.b32.xlu1 %v2428_v43, %s2553_s16  ;;  %v2430_v52 = vpop.eup %2429 }
 0x353   :  { %v2432_v54 = vpop.eup %2431  ;;  %v1595_v55 = vadd.f32 1.0, %v2430_v52 }
 0x354   :  { %v1596_v56 = vadd.f32 1.0, %v2432_v54  ;;  %v2434_v58 = vpop.eup %2433 }
 0x355   :  { %1763 = vrot.lane.b32.xlu0 %v2064_v42, %s2554_s2  ;;  %2439 = vrcp.f32 %v1595_v55  ;;  %v1597_v59 = vadd.f32 1.0, %v2434_v58  ;;  %v2436_v60 = vpop.eup %2435  ;;  %v2070_v42 = vld [vmem:[%s2941_s5 + $0x6] ss:$0 sm:$0xff] }
 0x356   :  { %1765 = vrot.lane.b32.xlu1 %v2065_v44, %s2554_s2  ;;  %2441 = vrcp.f32 %v1596_v56  ;;  %v1598_v62 = vadd.f32 1.0, %v2436_v60  ;;  %v2438_v1 = vpop.eup %2437 }
 0x357   :  { %2443 = vpow2.f32 %v2061_v57  ;;  %v1599_v5 = vadd.f32 1.0, %v2438_v1 }
 0x358   :  { %2445 = vrcp.f32 %v1597_v59 }
 0x359   :  { %2447 = vpow2.f32 %v2062_v61 }
 0x35a   :  { %1767 = vrot.lane.b32.xlu1 %v2066_v45, %s2554_s2  ;;  %2449 = vrcp.f32 %v1598_v62 }
 0x35b   :  { %2451 = vpow2.f32 %v2063_v63 }
 0x35e   :  { %1769 = vrot.lane.b32.xlu1 %v2067_v46, %s2554_s2 }
 0x362   :  { %1771 = vrot.lane.b32.xlu1 %v2068_v47, %s2554_s2  ;;  %v2875_v2 = vpop.eup %2439 }
 0x363   :  { %v2878_v6 = vpop.eup %2441 }
 0x364   :  { %v2444_v7 = vpop.eup %2443 }
 0x365   :  { %v1600_v10 = vadd.f32 1.0, %v2444_v7  ;;  %v2881_v11 = vpop.eup %2445 }
 0x366   :  { %v2448_v12 = vpop.eup %2447 }
 0x367   :  { %v2884_v14 = vpop.eup %2449  ;;  %v1601_v15 = vadd.f32 1.0, %v2448_v12 }
 0x368   :  { %v2452_v17 = vpop.eup %2451 }
 0x369   :  { %v1602_v20 = vadd.f32 1.0, %v2452_v17 }
 0x3a5   :  { %v1636_v3 = vpop.permute.xlu0 %1635 }
 0x3a6   :  { %v1659_v4 = vmul.f32 %v2875_v2, %v1636_v3 }
 0x3a8   :  { %2453 = vtanh.f32 %v1659_v4 }
 0x3a9   :  { %v1638_v8 = vpop.permute.xlu1 %1637  ;;  %2455 = vrcp.f32 %v1599_v5 }
 0x3aa   :  { %v1660_v9 = vmul.f32 %v2878_v6, %v1638_v8 }
 0x3ac   :  { %2457 = vtanh.f32 %v1660_v9 }
 0x3ad   :  { %2459 = vrcp.f32 %v1600_v10 }
 0x3ae   :  { %v1640_v0 = vpop.permute.xlu0 %1639 }
 0x3af   :  { %v1661_v13 = vmul.f32 %v2881_v11, %v1640_v0 }
 0x3b1   :  { %2461 = vtanh.f32 %v1661_v13 }
 0x3b2   :  { %v1642_v16 = vpop.permute.xlu1 %1641 }
 0x3b3   :  { %v1662_v18 = vmul.f32 %v2884_v14, %v1642_v16 }
 0x3b5   :  { %v2454_v19 = vpop.eup %2453  ;;  %2463 = vtanh.f32 %v1662_v18 }
 0x3b6   :  { %2465 = vrcp.f32 %v1601_v15  ;;  %1683 = vrot.lane.b32.xlu0 %v2454_v19, %s2554_s2  ;;  %v2456_v21 = vpop.eup %2455 }
 0x3b7   :  { %2467 = vrcp.f32 %v1602_v20 }
 0x3b9   :  { %v2458_v22 = vpop.eup %2457  ;;  %v1644_v23 = vpop.permute.xlu0 %1643 }
 0x3ba   :  { %v1663_v24 = vmul.f32 %v2456_v21, %v1644_v23  ;;  %1685 = vrot.lane.b32.xlu1 %v2458_v22, %s2554_s2  ;;  %v2460_v25 = vpop.eup %2459 }
 0x3bb   :  { %v1646_v27 = vpop.permute.xlu1 %1645 }
 0x3bc   :  { %2469 = vtanh.f32 %v1663_v24  ;;  %v1664_v28 = vmul.f32 %v2460_v25, %v1646_v27 }
 0x3be   :  { %v2462_v26 = vpop.eup %2461  ;;  %2471 = vtanh.f32 %v1664_v28  ;;  %v1868_v28 = vlaneseq }
 0x3bf   :  { %1687 = vrot.lane.b32.xlu0 %v2462_v26, %s2554_s2 }
 0x3c2   :  { %v2464_v29 = vpop.eup %2463 }
 0x3c3   :  { %v2466_v30 = vpop.eup %2465  ;;  %v1648_v31 = vpop.permute.xlu0 %1647  ;;  %1689 = vrot.lane.b32.xlu1 %v2464_v29, %s2554_s2 }
 0x3c4   :  { %v1665_v32 = vmul.f32 %v2466_v30, %v1648_v31  ;;  %v2468_v34 = vpop.eup %2467  ;;  %v1650_v35 = vpop.permute.xlu1 %1649  ;;  %v1871_v31 = vshrl.u32 %v1868_v28, 7 }
 0x3c5   :  { %v1666_v36 = vmul.f32 %v2468_v34, %v1650_v35 }
 0x3c6   :  { %2473 = vtanh.f32 %v1665_v32 }
 0x3c7   :  { %1773 = vrot.lane.b32.xlu1 %v2069_v33, %s2554_s2  ;;  %2475 = vtanh.f32 %v1666_v36  ;;  %v1764_v46 = vpop.permute.xlu0 %1763 }
 0x3c8   :  { %v1766_v43 = vpop.permute.xlu1 %1765 }
 0x3c9   :  { %v2470_v38 = vpop.eup %2469 }
 0x3ca   :  { %1691 = vrot.lane.b32.xlu0 %v2470_v38, %s2554_s2 }
 0x3cb   :  { %1777 = vrot.lane.b32.xlu1 %v2071_v37, %s2554_s2  ;;  %v2472_v39 = vpop.eup %2471 }
 0x3cc   :  { %v1768_v44 = vpop.permute.xlu1 %1767 }
 0x3ce   :  { %1693 = vrot.lane.b32.xlu0 %v2472_v39, %s2554_s2 }
 0x3d0   :  { %v1770_v45 = vpop.permute.xlu1 %1769 }
 0x3d3   :  { %v2474_v40 = vpop.eup %2473 }
 0x3d4   :  { %1695 = vrot.lane.b32.xlu0 %v2474_v40, %s2554_s2  ;;  %v2476_v41 = vpop.eup %2475  ;;  %v1772_v47 = vpop.permute.xlu1 %1771 }
 0x3d8   :  { %1697 = vrot.lane.b32.xlu0 %v2476_v41, %s2554_s2 }
 0x3dc   :  { %1775 = vrot.lane.b32.xlu0 %v2070_v42, %s2554_s2 }
 0x428   :  { %v1684_v48 = vpop.permute.xlu0 %1683 }
 0x429   :  { %v1707_v49 = vmul.f32 %v2875_v2, %v1684_v48 }
 0x42b   :  { %v1787_v50 = vmul.f32 %v1764_v46, %v1707_v49 }
 0x42c   :  { %v1686_v51 = vpop.permute.xlu1 %1685 }
 0x42d   :  { %v1708_v52 = vmul.f32 %v2878_v6, %v1686_v51  ;;  %1803 = vrot.lane.b32.xlu0 %v1787_v50, %s2555_s23 }
 0x42f   :  { %v1788_v53 = vmul.f32 %v1766_v43, %v1708_v52 }
 0x431   :  { %v1688_v54 = vpop.permute.xlu0 %1687  ;;  %1805 = vrot.lane.b32.xlu1 %v1788_v53, %s2555_s23 }
 0x432   :  { %v1709_v55 = vmul.f32 %v2881_v11, %v1688_v54  ;;  %v1852_v54 = vld [vmem:[%s2943_s7] sm:$0x3]  ;;  %s2521_s7 = scalar_lea.vmem %s2007_s10, 32 }
 0x433   :  { %p2522_p10 = scmp.ne.s32.totalorder %s2007_s10, %s2521_s7  ;;  %p2527_p12 = scmp.lt.s32.totalorder %s2521_s7, %s2521_s7 }
 0x434   :  { %v1789_v56 = vmul.f32 %v1768_v44, %v1709_v55  ;;  %v2072_v55 = vld [vmem:[%s2942_s6] ss:$0 sm:$0xff] }
 0x435   :  { %v1690_v57 = vpop.permute.xlu1 %1689  ;;  %p2528_p13 = por %p2527_p12, %p2526_p11 }
 0x436   :  { %v1710_v58 = vmul.f32 %v2884_v14, %v1690_v57  ;;  %1807 = vrot.lane.b32.xlu0 %v1789_v56, %s2555_s23 }
 0x437   :  { %p2529_p0 = pnand %p2528_p13, %p2522_p10 }
 0x438   :  { %v1790_v59 = vmul.f32 %v1770_v45, %v1710_v58 }
 0x439   :  { %v1774_v1 = vpop.permute.xlu1 %1773 }
 0x43a   :  { %1809 = vrot.lane.b32.xlu1 %v1790_v59, %s2555_s23 }
 0x43c   :  { %v1692_v60 = vpop.permute.xlu0 %1691 }
 0x43d   :  { %v1711_v61 = vmul.f32 %v2456_v21, %v1692_v60  ;;  %v1778_v6 = vpop.permute.xlu1 %1777 }
 0x43f   :  { %v1791_v62 = vmul.f32 %v1772_v47, %v1711_v61 }
 0x440   :  { %v1694_v63 = vpop.permute.xlu0 %1693 }
 0x441   :  { %1811 = vrot.lane.b32.xlu0 %v1791_v62, %s2555_s23  ;;  %v1712_v2 = vmul.f32 %v2460_v25, %v1694_v63 }
 0x443   :  { %v1792_v3 = vmul.f32 %v1774_v1, %v1712_v2 }
 0x445   :  { %1813 = vrot.lane.b32.xlu1 %v1792_v3, %s2555_s23 }
 0x446   :  { %v1696_v4 = vpop.permute.xlu0 %1695 }
 0x447   :  { %v1713_v8 = vmul.f32 %v2466_v30, %v1696_v4  ;;  %v1869_v30 = vand.u32 127, %v1868_v28 }
 0x44a   :  { %v1698_v5 = vpop.permute.xlu0 %1697 }
 0x44b   :  { %v1714_v7 = vmul.f32 %v2468_v34, %v1698_v5  ;;  %v1872_v34 = vsub.s32 %v1869_v30, %v1871_v31 }
 0x44d   :  { %v1794_v9 = vmul.f32 %v1778_v6, %v1714_v7 }
 0x44e   :  { %v1776_v10 = vpop.permute.xlu0 %1775 }
 0x44f   :  { %v1793_v11 = vmul.f32 %v1776_v10, %v1713_v8  ;;  %1817 = vrot.lane.b32.xlu1 %v1794_v9, %s2555_s23 }
 0x451   :  { %1815 = vrot.lane.b32.xlu0 %v1793_v11, %s2555_s23 }
 0x49f   :  { %v1804_v0 = vpop.permute.xlu0 %1803 }
 0x4a0   :  { %v1828_v12 = vsel %vm1827_vm2, %v1804_v0, 0.0 }
 0x4a1   :  { %1829 = vadd.xlane.f32.xlu0 %v1828_v12 }
 0x4a3   :  { %v1806_v13 = vpop.permute.xlu1 %1805 }
 0x4a4   :  { %v1831_v14 = vsel %vm1827_vm2, %v1806_v13, 0.0 }
 0x4a5   :  { %1832 = vadd.xlane.f32.xlu1 %v1831_v14 }
 0x4a8   :  { %v1808_v15 = vpop.permute.xlu0 %1807 }
 0x4a9   :  { %v1834_v16 = vsel %vm1827_vm2, %v1808_v15, 0.0 }
 0x4aa   :  { %1835 = vadd.xlane.f32.xlu0 %v1834_v16 }
 0x4ac   :  { %v1810_v17 = vpop.permute.xlu1 %1809 }
 0x4ad   :  { %v1837_v18 = vsel %vm1827_vm2, %v1810_v17, 0.0 }
 0x4ae   :  { %1838 = vadd.xlane.f32.xlu0 %v1837_v18 }
 0x4b3   :  { %v1812_v19 = vpop.permute.xlu0 %1811 }
 0x4b4   :  { %v1840_v20 = vsel %vm1827_vm2, %v1812_v19, 0.0 }
 0x4b5   :  { %1841 = vadd.xlane.f32.xlu1 %v1840_v20 }
 0x4b7   :  { %v1814_v21 = vpop.permute.xlu1 %1813 }
 0x4b8   :  { %v1843_v22 = vsel %vm1827_vm2, %v1814_v21, 0.0 }
 0x4b9   :  { %1844 = vadd.xlane.f32.xlu0 %v1843_v22 }
 0x4c1   :  { %v1818_v23 = vpop.permute.xlu1 %1817 }
 0x4c2   :  { %v1849_v24 = vsel %vm1827_vm2, %v1818_v23, 0.0 }
 0x4c3   :  { %1850 = vadd.xlane.f32.xlu0 %v1849_v24  ;;  %v1816_v25 = vpop.permute.xlu0 %1815 }
 0x4c4   :  { %v1846_v26 = vsel %vm1827_vm2, %v1816_v25, 0.0 }
 0x4c5   :  { %1847 = vadd.xlane.f32.xlu1 %v1846_v26 }
 0x52a   :  { %v1830_v27 = vpop.xlane.xlu0 %1829 }
 0x52b   :  { %v1873_v39 = vrot.slane %v1830_v27, %v1872_v34 }
 0x52e   :  { %v1833_v32 = vpop.xlane.xlu1 %1832 }
 0x52f   :  { %v1877_v35 = vrot.slane %v1833_v32, %v1872_v34 }
 0x531   :  { %v1903_v42 = vsel %vm1902_vm3, %v1877_v35, %v1873_v39 }
 0x533   :  { %v1836_v29 = vpop.xlane.xlu0 %1835 }
 0x534   :  { %v1881_v37 = vrot.slane %v1836_v29, %v1872_v34 }
 0x536   :  { %v1905_v44 = vsel %vm1904_vm4, %v1881_v37, %v1903_v42 }
 0x537   :  { %v1839_v33 = vpop.xlane.xlu0 %1838 }
 0x538   :  { %v1885_v40 = vrot.slane %v1839_v33, %v1872_v34 }
 0x53a   :  { %v1907_v46 = vsel %vm1906_vm5, %v1885_v40, %v1905_v44 }
 0x53e   :  { %v1842_v36 = vpop.xlane.xlu1 %1841 }
 0x53f   :  { %v1889_v41 = vrot.slane %v1842_v36, %v1872_v34 }
 0x541   :  { %v1909_v48 = vsel %vm1908_vm6, %v1889_v41, %v1907_v46 }
 0x542   :  { %v1845_v38 = vpop.xlane.xlu0 %1844 }
 0x543   :  { %v1893_v43 = vrot.slane %v1845_v38, %v1872_v34 }
 0x545   :  { %v1911_v50 = vsel %vm1910_vm7, %v1893_v43, %v1909_v48 }
 0x54c   :  { %v1851_v45 = vpop.xlane.xlu0 %1850 }
 0x54d   :  { %v1901_v51 = vrot.slane %v1851_v45, %v1872_v34 }
 0x54e   :  { %v1848_v47 = vpop.xlane.xlu1 %1847 }
 0x54f   :  { %v1897_v49 = vrot.slane %v1848_v47, %v1872_v34 }
 0x551   :  { %v1913_v52 = vsel %vm1912_vm8, %v1897_v49, %v1911_v50 }
 0x552   :  { %v1915_v53 = vsel %vm1914_vm9, %v1901_v51, %v1913_v52 }
 0x553   :  { %2335 = vmatpush3.xpose.msk.msra.mxu0 %vm1916_vm10, %v1915_v53 }
 0x556   :  { %2337 = vmatmul.mubr.msk.f32.vlgmr.msra.gmra.mxu0 %vm1916_vm10, %v1852_v54 }
 0x616   :  { %v1988_v56 = vpop.f32.mrf.mxu0 }
 0x617   :  { %v1989_v57 = vadd.f32 %v2072_v55, %v1988_v56 }
 0x618   :  { %v2338_v58 = vpop.f32.mrf.mxu0 }
 0x619   :  { %v2075_v59 = vmul.f32 -1.442695, %v1989_v57 }
 0x61b   :  { %2477 = vpow2.f32 %v2075_v59 }
 0x628   :  { %v2478_v60 = vpop.eup %2477 }
 0x629   :  { %v1995_v61 = vadd.f32 1.0, %v2478_v60 }
 0x62b   :  { %2479 = vrcp.f32 %v1995_v61 }
 0x638   :  { %v2480_v62 = vpop.eup %2479 }
 0x639   :  { %1999 = vst.msk [vmem:[#allocation7] sm:$0x3] %vm1998_vm11, %v2480_v62 }
 0x63a   :  { %2532 = shalt.err (!%p2529_p0)
}
 0x63b   :  { %2009 = dma.vmem_to_hbm [thread:$0]  %s2007_s10, 32, %s2944_s8, [#allocation4]  }
 0x63c   :  { %2545 = dma.done.wait [#allocation4], 32  }
 0x63d   :  { %2546 = vsyncadd [#allocation4], 4294967264 }
 0x63e   :  { %2013 = vsyncpa [#allocation3], 1 }
 0x63f   :  { %2014 = vsyncpa [#allocation6], 1 }
 0x640   :  { %2015 = vsyncpa [#allocation4], 1 }

</bundles_post_ra>
